<compile_context>
chip_gen: v7x
topology: tpu7x:2x2x1
jax: 0.10.0
libtpu: 0.0.40
codegen_flags: <defaults>
</compile_context>

<pallas_src>
import jax
import jax.numpy as jnp
from jax.experimental import pallas as pl
from jax.experimental.pallas import tpu as pltpu


def _single_variance_kernel(var_ref, out_ref):
    # var_ref: (1, 1) f32 in SMEM; out_ref: (1, 1) f32 in VMEM.
    s = var_ref[0, 0] * 10.0                              # scalar mul in SMEM path
    x = jnp.full(out_ref.shape, s, dtype=jnp.float32)     # (1,1) splat
    out_ref[...] = jnp.exp(x)                             # one EUP exp, one store


@jax.jit
def single_variance_forward(variance_scalar: jax.Array) -> jax.Array:
    """Pallas equivalent of SingleVarianceNetwork.forward().

    Args:
      variance_scalar: 0-d float32 array (the `variance` parameter).
    Returns:
      0-d float32 array equal to exp(variance * 10.0).
    """
    var2d = jnp.asarray(variance_scalar, dtype=jnp.float32).reshape(1, 1)

    out = pl.pallas_call(
        _single_variance_kernel,
        out_shape=jax.ShapeDtypeStruct((1, 1), jnp.float32),
        in_specs=[pl.BlockSpec(memory_space=pltpu.MemorySpace.SMEM)],
        out_specs=pl.BlockSpec(memory_space=pltpu.MemorySpace.VMEM),
    )(var2d)

    # (1,1) -> 0-d scalar, matching the PyTorch semantics (stays inside jit,
    # so this is just metadata, not a separate dispatch).
    return out.reshape(())


class SingleVarianceNetwork:
    """Thin JAX wrapper mirroring the PyTorch module's interface."""

    def __init__(self, init_val: float):
        # Deterministic parameter init (matches nn.Parameter(torch.tensor(init_val))).
        self.variance = jnp.asarray(init_val, dtype=jnp.float32)

    def __call__(self) -> jax.Array:
        return single_variance_forward(self.variance)


if __name__ == "__main__":
    # forward() takes no tensor inputs; the parameter is a deterministic
    # constant init_val, so no PRNGKey is required for reproducibility.
    init_val = 0.3  # typical NeuS init
    net = SingleVarianceNetwork(init_val)

    out = net()
    out = jax.block_until_ready(out)

    # Reference check against plain JAX.
    ref = jnp.exp(jnp.float32(init_val) * 10.0)
    assert out.shape == ()
    assert out.dtype == jnp.float32
    assert jnp.allclose(out, ref, rtol=1e-6, atol=1e-6)

    print("KERNEL_OK")
</pallas_src>

<mosaic_0001>
module attributes {stable_mosaic.version = 11 : i64} {
  func.func @_single_variance_kernel(%arg0: memref<1x1xf32, #tpu.memory_space<smem>>, %arg1: memref<1x1xf32, #tpu.memory_space<vmem>>) attributes {dimension_semantics = [], scalar_prefetch = 0 : i64, scratch_operands = 0 : i64, tpu.core_type = #tpu.core_type<tc>} {
    %c0 = arith.constant 0 : index
    %c0_0 = arith.constant 0 : index
    %0 = memref.load %arg0[%c0, %c0_0] : memref<1x1xf32, #tpu.memory_space<smem>>
    %cst = arith.constant 1.000000e+01 : f32
    %1 = arith.mulf %0, %cst : f32
    %2 = vector.broadcast %1 : f32 to vector<1x1xf32>
    %3 = math.exp %2 : vector<1x1xf32>
    %c0_1 = arith.constant 0 : index
    %c0_2 = arith.constant 0 : index
    %4 = vector.load %arg1[%c0_1, %c0_2] : memref<1x1xf32, #tpu.memory_space<vmem>>, vector<1x1xf32>
    tpu.vector_store %arg1[%c0_1, %c0_2], %3 {strides = array<i32>} : memref<1x1xf32, #tpu.memory_space<vmem>>, vector<1x1xf32>,
    return
  }
}

</mosaic_0001>

<bundles_post_ra>
// kernel: single_variance_forward.1
= control target key start
LH: loop header
LB: loop body
LE: loop exit
PB: predicated region body
PF: predicated region fallthrough
CT: control target
= control target key end

     0   :  { %s84_s0 = inlined_call_operand.<no memory space> [shape: f32[1,1], index: 0, kind: input, shape index: {}]   ;;  %s85_s1 = inlined_call_operand.hbm [shape: f32[1,1], index: 1, kind: output, shape index: {}]  }
   0x1   :  { %s11_s8 = smul.f32 10.0, %s84_s0 }
   0x2   :  { %7 = vsyncpa [#allocation4], 0  ;;  %s58_s9 = smov [#allocation3]   ;;  %vm15_vm0 = vcmask 0  }
   0x3   :  { %v12_v0 = vstv %s11_s8  ;;  %s23_s10 = sshll.u32 %s58_s9, 4  ;;  %s24_s10 = int_to_ptr.vmem [resolvable:$true] %s23_s10 }
   0x4   :  { %v13_v1 = vmul.f32 1.442695, %v12_v0  ;;  %s34_s11 = scalar_lea.vmem %s24_s10, 16  ;;  %s38_s12 = scalar_lea.vmem %s24_s10, 32 }
   0x5   :  { %p35_p0 = scmp.ne.s32.totalorder %s24_s10, %s34_s11  ;;  %p39_p1 = scmp.lt.s32.totalorder %s24_s10, %s24_s10 }
   0x6   :  { %32 = vpow2.f32 %v13_v1  ;;  %p40_p2 = scmp.lt.s32.totalorder %s38_s12, %s34_s11 }
   0x8   :  { %p41_p3 = por %p40_p2, %p39_p1 }
   0xa   :  { %p42_p4 = pnand %p41_p3, %p35_p0 }
  0x10   :  { %v33_v2 = vpop.eup %32 }
  0x11   :  { %16 = vst.msk [vmem:[#allocation3] sm:$0x1] %vm15_vm0, %v33_v2 }
  0x12   :  { %45 = shalt.err (!%p42_p4)
}
  0x13   :  { %s46_s14 = scalar_lea.hbm %s85_s1, 16 }
  0x14   :  { %p47_p5 = scmp.ne.s32.totalorder %s85_s1, %s46_s14  ;;  %p50_p6 = scmp.lt.u32.totalorder %s46_s14, %s85_s1 }
  0x16   :  { %p52_p7 = pnand %p50_p6, %p47_p5 }
  0x18   :  { %55 = shalt.err (!%p52_p7)
}
  0x19   :  { %26 = dma.vmem_to_hbm [thread:$0]  %s24_s10, 16, %s85_s1, [#allocation4]  }
  0x1a   :  { %56 = dma.done.wait [#allocation4], 16  }
  0x1b   :  { %57 = vsyncadd [#allocation4], 4294967280 }
  0x1c   :  { %30 = vsyncpa [#allocation4], 1 }

</bundles_post_ra>
